<compile_context>
chip_gen: v6e
topology: v6e:2x2x1
jax: 0.10.0
libtpu: 0.0.40
codegen_flags: <defaults>
</compile_context>

<pallas_src>
import functools

import jax
import jax.numpy as jnp
from jax import lax
from jax.experimental import pallas as pl
from jax.experimental.pallas import tpu as pltpu


def _conv3x3_gn_relu_kernel(x_ref, w_ref, gamma_ref, beta_ref, mask_ref, o_ref,
                            patch_ref, *, cin, h, w, cg, eps):
    """One (sample, channel-block) per grid step.

    x_ref:     (1, Cin, Lf)  bf16  zero-padded input, spatial plane flattened with row stride W+2
    w_ref:     (BC, 9*Cin)   bf16  flattened conv weights (tap-major, channel-minor K ordering)
    gamma_ref: (BC, 1)       f32   GroupNorm scale
    beta_ref:  (BC, 1)       f32   GroupNorm shift
    mask_ref:  (1, Hq)       f32   1.0 on valid output columns, 0.0 on the 2 junk columns per row
    o_ref:     (1, BC, Hq)   f32   output block (Hq = H*(W+2); junk columns cropped in wrapper)
    patch_ref: (9*Cin, Hq)   bf16  VMEM scratch holding the im2col operand
    """
    wp = w + 2
    hq = h * wp

    # Build the im2col operand in VMEM: each 3x3 tap is one contiguous lane-slice of the flattened
    # padded input (static offset dy*(W+2)+dx), copied into its (Cin, Hq) row block of the scratch.
    for tap in range(9):
        dy, dx = tap // 3, tap % 3
        off = dy * wp + dx
        patch_ref[pl.ds(tap * cin, cin), :] = x_ref[0, :, pl.ds(off, hq)]

    # Single fused MXU matmul for all 9 taps, f32 accumulation.
    acc = jnp.dot(w_ref[...], patch_ref[...],
                  preferred_element_type=jnp.float32)           # (BC, Hq) f32

    bc = acc.shape[0]
    g = bc // cg  # groups in this channel block (block is a whole number of groups by construction)

    # GroupNorm statistics over the *valid* columns only (junk columns masked out), then group
    # combine on tiny (g, cg) vectors.  Count is the true cg*H*W.
    mask = mask_ref[...]                                        # (1, Hq)
    am = acc * mask
    s = jnp.sum(am, axis=1, keepdims=True)                      # (BC, 1)
    ss = jnp.sum(am * acc, axis=1, keepdims=True)               # (BC, 1)  == sum(acc^2 * mask)
    gsum = jnp.sum(s.reshape(g, cg), axis=1, keepdims=True)     # (g, 1)
    gsumsq = jnp.sum(ss.reshape(g, cg), axis=1, keepdims=True)  # (g, 1)

    cnt = jnp.float32(cg * h * w)
    mean_g = gsum / cnt
    var_g = jnp.maximum(gsumsq / cnt - mean_g * mean_g, 0.0)    # biased variance (matches PyTorch)
    inv_g = lax.rsqrt(var_g + eps)                              # EUP

    mean_c = jnp.broadcast_to(mean_g, (g, cg)).reshape(bc, 1)
    inv_c = jnp.broadcast_to(inv_g, (g, cg)).reshape(bc, 1)

    scale = gamma_ref[...] * inv_c                              # (BC, 1)
    shift = beta_ref[...] - mean_c * scale                      # (BC, 1)

    y = jnp.maximum(acc * scale + shift, 0.0)                   # fused affine + ReLU
    o_ref[0] = y.astype(o_ref.dtype)


def conv3x3_gn_relu(x_nchw, weight_oihw, gamma, beta, *, num_groups=32, eps=1e-5, block_c=None):
    """Pallas implementation of Conv3x3GNReLU.forward (upsample=False).

    x_nchw:      (N, Cin, H, W)    float32
    weight_oihw: (Cout, Cin, 3, 3) float32 (no bias)
    gamma, beta: (Cout,)           GroupNorm affine params
    returns:     (N, Cout, H, W)   float32
    """
    N, Cin, H, W = x_nchw.shape
    Cout = weight_oihw.shape[0]
    assert Cout % num_groups == 0
    cg = Cout // num_groups
    if block_c is None:
        block_c = Cout  # fewest grid steps / best MXU M occupancy; split only if VMEM forces it
    assert Cout % block_c == 0 and block_c % cg == 0, "channel block must be whole groups"

    Wp = W + 2               # padded width == row stride of the flattened plane
    Hq = H * Wp              # kernel output lane extent (2 junk cols per row, cropped below)
    Lf = (H + 3) * Wp        # flattened padded length (+1 top row, +2 bottom rows so every tap
                             #  slice [off, off+Hq) stays in bounds; extra rows are zeros)
    K = 9 * Cin

    # --- wrapper-side glue: one pad pass, NO im2col materialization ---
    x_pad = jnp.pad(x_nchw, ((0, 0), (0, 0), (1, 2), (1, 1))).astype(jnp.bfloat16)
    x_flat = x_pad.reshape(N, Cin, Lf)

    # weights flattened to one dense (Cout, 9*Cin) tile matching the patch K ordering.
    w_t = jnp.transpose(weight_oihw, (0, 2, 3, 1)).reshape(Cout, K).astype(jnp.bfloat16)
    gamma2 = gamma.reshape(Cout, 1).astype(jnp.float32)
    beta2 = beta.reshape(Cout, 1).astype(jnp.float32)

    # validity mask over the Hq output columns (0.0 on the 2 junk columns per spatial row).
    col = jnp.arange(Hq, dtype=jnp.int32) % Wp
    mask = (col < W).astype(jnp.float32).reshape(1, Hq)

    kernel = functools.partial(_conv3x3_gn_relu_kernel, cin=Cin, h=H, w=W, cg=cg, eps=eps)

    cost = pl.CostEstimate(
        flops=2 * N * Cout * K * H * W,
        transcendentals=N * num_groups,
        bytes_accessed=(x_flat.size * 2 + w_t.size * 2
                        + (gamma2.size + beta2.size + mask.size) * 4
                        + N * Cout * Hq * 4),
    )

    out = pl.pallas_call(
        kernel,
        out_shape=jax.ShapeDtypeStruct((N, Cout, Hq), jnp.float32),
        grid_spec=pltpu.PrefetchScalarGridSpec(
            num_scalar_prefetch=0,
            grid=(N, Cout // block_c),   # cb innermost: input block resident across channel blocks
            in_specs=[
                pl.BlockSpec((1, Cin, Lf), lambda n, cb: (n, 0, 0)),
                pl.BlockSpec((block_c, K), lambda n, cb: (cb, 0)),
                pl.BlockSpec((block_c, 1), lambda n, cb: (cb, 0)),
                pl.BlockSpec((block_c, 1), lambda n, cb: (cb, 0)),
                pl.BlockSpec((1, Hq), lambda n, cb: (0, 0)),
            ],
            out_specs=pl.BlockSpec((1, block_c, Hq), lambda n, cb: (n, cb, 0)),
            scratch_shapes=[pltpu.VMEM((K, Hq), jnp.bfloat16)],
        ),
        compiler_params=pltpu.CompilerParams(
            # megacore shards samples; cb is "arbitrary" so both v7x cores never duplicate the input DMA
            dimension_semantics=("parallel", "arbitrary"),
        ),
        cost_estimate=cost,
    )(x_flat, w_t, gamma2, beta2, mask)

    # crop the 2 junk columns per row; layout is already channels-first.
    return out.reshape(N, Cout, H, Wp)[:, :, :, :W]


def _reference(x_nchw, weight_oihw, gamma, beta, *, num_groups=32, eps=1e-5):
    """Pure-JAX reference with the same bf16 operand cast (XLA conv + GroupNorm + ReLU)."""
    y = lax.conv_general_dilated(
        x_nchw.astype(jnp.bfloat16), weight_oihw.astype(jnp.bfloat16),
        window_strides=(1, 1), padding="SAME",
        dimension_numbers=("NCHW", "OIHW", "NCHW"),
        preferred_element_type=jnp.float32)
    N, C, H, W = y.shape
    Cg = C // num_groups
    yg = y.reshape(N, num_groups, Cg, H, W)
    mean = jnp.mean(yg, axis=(2, 3, 4), keepdims=True)
    var = jnp.mean((yg - mean) ** 2, axis=(2, 3, 4), keepdims=True)
    yn = ((yg - mean) / jnp.sqrt(var + eps)).reshape(N, C, H, W)
    yn = yn * gamma.reshape(1, C, 1, 1) + beta.reshape(1, C, 1, 1)
    return jnp.maximum(yn, 0.0)


if __name__ == "__main__":
    # Module config: Conv3x3GNReLU(in_channels=4, out_channels=32, upsample=False)
    # (out_channels must be divisible by 32 for GroupNorm(32, C)).
    in_channels, out_channels = 4, 32
    N, H, W = 2, 16, 16

    key = jax.random.PRNGKey(0)
    kx, kw, kg, kb = jax.random.split(key, 4)
    x = jax.random.normal(kx, (N, in_channels, H, W), jnp.float32)
    weight = 0.1 * jax.random.normal(kw, (out_channels, in_channels, 3, 3), jnp.float32)
    gamma = 1.0 + 0.1 * jax.random.normal(kg, (out_channels,), jnp.float32)
    beta = 0.05 * jax.random.normal(kb, (out_channels,), jnp.float32)

    out = conv3x3_gn_relu(x, weight, gamma, beta)   # default block_c = Cout -> grid (N, 1)
    out = jax.block_until_ready(out)

    ref = jax.block_until_ready(_reference(x, weight, gamma, beta))
    assert out.shape == (N, out_channels, H, W)
    assert jnp.allclose(out, ref, atol=2e-3, rtol=2e-3), "mismatch vs JAX reference"

    print("KERNEL_OK")
</pallas_src>

<mosaic_0001>
module attributes {stable_mosaic.version = 11 : i64} {
  func.func @_conv3x3_gn_relu_kernel(%arg0: i32, %arg1: i32, %arg2: memref<1x4x342xbf16, #tpu.memory_space<vmem>>, %arg3: memref<32x36xbf16, #tpu.memory_space<vmem>>, %arg4: memref<32x1xf32, #tpu.memory_space<vmem>>, %arg5: memref<32x1xf32, #tpu.memory_space<vmem>>, %arg6: memref<1x288xf32, #tpu.memory_space<vmem>>, %arg7: memref<1x32x288xf32, #tpu.memory_space<vmem>>, %arg8: memref<36x288xbf16, #tpu.memory_space<vmem>>) attributes {dimension_semantics = [#tpu.dimension_semantics<parallel>, #tpu.dimension_semantics<arbitrary>], iteration_bounds = array<i64: 2, 1>, scalar_prefetch = 0 : i64, scratch_operands = 1 : i64, tpu.core_type = #tpu.core_type<tc>, window_params = [{transform_indices = @transform_0, window_bounds = array<i64: 1, 4, 342>}, {transform_indices = @transform_1, window_bounds = array<i64: 32, 36>}, {transform_indices = @transform_2, window_bounds = array<i64: 32, 1>}, {transform_indices = @transform_3, window_bounds = array<i64: 32, 1>}, {pipeline_mode = #tpu.pipeline_mode<synchronous>, transform_indices = @transform_4, window_bounds = array<i64: 1, 288>}, {transform_indices = @transform_5, window_bounds = array<i64: 1, 32, 288>}]} {
    %c0 = arith.constant 0 : index
    %c0_0 = arith.constant 0 : index
    %c0_1 = arith.constant 0 : index
    %0 = vector.load %arg2[%c0, %c0_0, %c0_1] : memref<1x4x342xbf16, #tpu.memory_space<vmem>>, vector<1x4x288xbf16>
    %1 = vector.shape_cast %0 : vector<1x4x288xbf16> to vector<4x288xbf16>
    %c0_2 = arith.constant 0 : index
    %c0_3 = arith.constant 0 : index
    %2 = vector.load %arg8[%c0_2, %c0_3] : memref<36x288xbf16, #tpu.memory_space<vmem>>, vector<4x288xbf16>
    tpu.vector_store %arg8[%c0_2, %c0_3], %1 {strides = array<i32>} : memref<36x288xbf16, #tpu.memory_space<vmem>>, vector<4x288xbf16>,
    %c0_4 = arith.constant 0 : index
    %c0_5 = arith.constant 0 : index
    %c1 = arith.constant 1 : index
    %3 = vector.load %arg2[%c0_4, %c0_5, %c1] : memref<1x4x342xbf16, #tpu.memory_space<vmem>>, vector<1x4x288xbf16>
    %4 = vector.shape_cast %3 : vector<1x4x288xbf16> to vector<4x288xbf16>
    %c4 = arith.constant 4 : index
    %c0_6 = arith.constant 0 : index
    %5 = vector.load %arg8[%c4, %c0_6] : memref<36x288xbf16, #tpu.memory_space<vmem>>, vector<4x288xbf16>
    tpu.vector_store %arg8[%c4, %c0_6], %4 {strides = array<i32>} : memref<36x288xbf16, #tpu.memory_space<vmem>>, vector<4x288xbf16>,
    %c0_7 = arith.constant 0 : index
    %c0_8 = arith.constant 0 : index
    %c2 = arith.constant 2 : index
    %6 = vector.load %arg2[%c0_7, %c0_8, %c2] : memref<1x4x342xbf16, #tpu.memory_space<vmem>>, vector<1x4x288xbf16>
    %7 = vector.shape_cast %6 : vector<1x4x288xbf16> to vector<4x288xbf16>
    %c8 = arith.constant 8 : index
    %c0_9 = arith.constant 0 : index
    %8 = vector.load %arg8[%c8, %c0_9] : memref<36x288xbf16, #tpu.memory_space<vmem>>, vector<4x288xbf16>
    tpu.vector_store %arg8[%c8, %c0_9], %7 {strides = array<i32>} : memref<36x288xbf16, #tpu.memory_space<vmem>>, vector<4x288xbf16>,
    %c0_10 = arith.constant 0 : index
    %c0_11 = arith.constant 0 : index
    %c18 = arith.constant 18 : index
    %9 = vector.load %arg2[%c0_10, %c0_11, %c18] : memref<1x4x342xbf16, #tpu.memory_space<vmem>>, vector<1x4x288xbf16>
    %10 = vector.shape_cast %9 : vector<1x4x288xbf16> to vector<4x288xbf16>
    %c12 = arith.constant 12 : index
    %c0_12 = arith.constant 0 : index
    %11 = vector.load %arg8[%c12, %c0_12] : memref<36x288xbf16, #tpu.memory_space<vmem>>, vector<4x288xbf16>
    tpu.vector_store %arg8[%c12, %c0_12], %10 {strides = array<i32>} : memref<36x288xbf16, #tpu.memory_space<vmem>>, vector<4x288xbf16>,
    %c0_13 = arith.constant 0 : index
    %c0_14 = arith.constant 0 : index
    %c19 = arith.constant 19 : index
    %12 = vector.load %arg2[%c0_13, %c0_14, %c19] : memref<1x4x342xbf16, #tpu.memory_space<vmem>>, vector<1x4x288xbf16>
    %13 = vector.shape_cast %12 : vector<1x4x288xbf16> to vector<4x288xbf16>
    %c16 = arith.constant 16 : index
    %c0_15 = arith.constant 0 : index
    %14 = vector.load %arg8[%c16, %c0_15] : memref<36x288xbf16, #tpu.memory_space<vmem>>, vector<4x288xbf16>
    tpu.vector_store %arg8[%c16, %c0_15], %13 {strides = array<i32>} : memref<36x288xbf16, #tpu.memory_space<vmem>>, vector<4x288xbf16>,
    %c0_16 = arith.constant 0 : index
    %c0_17 = arith.constant 0 : index
    %c20 = arith.constant 20 : index
    %15 = vector.load %arg2[%c0_16, %c0_17, %c20] : memref<1x4x342xbf16, #tpu.memory_space<vmem>>, vector<1x4x288xbf16>
    %16 = vector.shape_cast %15 : vector<1x4x288xbf16> to vector<4x288xbf16>
    %c20_18 = arith.constant 20 : index
    %c0_19 = arith.constant 0 : index
    %17 = vector.load %arg8[%c20_18, %c0_19] : memref<36x288xbf16, #tpu.memory_space<vmem>>, vector<4x288xbf16>
    tpu.vector_store %arg8[%c20_18, %c0_19], %16 {strides = array<i32>} : memref<36x288xbf16, #tpu.memory_space<vmem>>, vector<4x288xbf16>,
    %c0_20 = arith.constant 0 : index
    %c0_21 = arith.constant 0 : index
    %c36 = arith.constant 36 : index
    %18 = vector.load %arg2[%c0_20, %c0_21, %c36] : memref<1x4x342xbf16, #tpu.memory_space<vmem>>, vector<1x4x288xbf16>
    %19 = vector.shape_cast %18 : vector<1x4x288xbf16> to vector<4x288xbf16>
    %c24 = arith.constant 24 : index
    %c0_22 = arith.constant 0 : index
    %20 = vector.load %arg8[%c24, %c0_22] : memref<36x288xbf16, #tpu.memory_space<vmem>>, vector<4x288xbf16>
    tpu.vector_store %arg8[%c24, %c0_22], %19 {strides = array<i32>} : memref<36x288xbf16, #tpu.memory_space<vmem>>, vector<4x288xbf16>,
    %c0_23 = arith.constant 0 : index
    %c0_24 = arith.constant 0 : index
    %c37 = arith.constant 37 : index
    %21 = vector.load %arg2[%c0_23, %c0_24, %c37] : memref<1x4x342xbf16, #tpu.memory_space<vmem>>, vector<1x4x288xbf16>
    %22 = vector.shape_cast %21 : vector<1x4x288xbf16> to vector<4x288xbf16>
    %c28 = arith.constant 28 : index
    %c0_25 = arith.constant 0 : index
    %23 = vector.load %arg8[%c28, %c0_25] : memref<36x288xbf16, #tpu.memory_space<vmem>>, vector<4x288xbf16>
    tpu.vector_store %arg8[%c28, %c0_25], %22 {strides = array<i32>} : memref<36x288xbf16, #tpu.memory_space<vmem>>, vector<4x288xbf16>,
    %c0_26 = arith.constant 0 : index
    %c0_27 = arith.constant 0 : index
    %c38 = arith.constant 38 : index
    %24 = vector.load %arg2[%c0_26, %c0_27, %c38] : memref<1x4x342xbf16, #tpu.memory_space<vmem>>, vector<1x4x288xbf16>
    %25 = vector.shape_cast %24 : vector<1x4x288xbf16> to vector<4x288xbf16>
    %c32 = arith.constant 32 : index
    %c0_28 = arith.constant 0 : index
    %26 = vector.load %arg8[%c32, %c0_28] : memref<36x288xbf16, #tpu.memory_space<vmem>>, vector<4x288xbf16>
    tpu.vector_store %arg8[%c32, %c0_28], %25 {strides = array<i32>} : memref<36x288xbf16, #tpu.memory_space<vmem>>, vector<4x288xbf16>,
    %c0_29 = arith.constant 0 : index
    %c0_30 = arith.constant 0 : index
    %27 = vector.load %arg3[%c0_29, %c0_30] : memref<32x36xbf16, #tpu.memory_space<vmem>>, vector<32x36xbf16>
    %c0_31 = arith.constant 0 : index
    %c0_32 = arith.constant 0 : index
    %28 = vector.load %arg8[%c0_31, %c0_32] : memref<36x288xbf16, #tpu.memory_space<vmem>>, vector<36x288xbf16>
    %cst = arith.constant dense<0.000000e+00> : vector<32x288xf32>
    %29 = tpu.matmul %27, %28, %cst {dimension_numbers = #tpu.dot_dimension_numbers<[1], [0], [0], [1], [0, 0, 1, 1], [], []>} : vector<32x36xbf16>, vector<36x288xbf16>, vector<32x288xf32> -> vector<32x288xf32>
    %c0_33 = arith.constant 0 : index
    %c0_34 = arith.constant 0 : index
    %30 = vector.load %arg6[%c0_33, %c0_34] : memref<1x288xf32, #tpu.memory_space<vmem>>, vector<1x288xf32>
    %31 = vector.broadcast %30 : vector<1x288xf32> to vector<32x288xf32>
    %32 = arith.mulf %29, %31 : vector<32x288xf32>
    %cst_35 = arith.constant dense<0.000000e+00> : vector<32xf32>
    %33 = vector.multi_reduction <add>, %32, %cst_35 [1] : vector<32x288xf32> to vector<32xf32>
    %34 = vector.shape_cast %33 : vector<32xf32> to vector<32x1xf32>
    %35 = arith.mulf %32, %29 : vector<32x288xf32>
    %cst_36 = arith.constant dense<0.000000e+00> : vector<32xf32>
    %36 = vector.multi_reduction <add>, %35, %cst_36 [1] : vector<32x288xf32> to vector<32xf32>
    %37 = vector.shape_cast %36 : vector<32xf32> to vector<32x1xf32>
    %cst_37 = arith.constant dense<0.000000e+00> : vector<32xf32>
    %38 = vector.multi_reduction <add>, %34, %cst_37 [1] : vector<32x1xf32> to vector<32xf32>
    %39 = vector.shape_cast %38 : vector<32xf32> to vector<32x1xf32>
    %cst_38 = arith.constant dense<0.000000e+00> : vector<32xf32>
    %40 = vector.multi_reduction <add>, %37, %cst_38 [1] : vector<32x1xf32> to vector<32xf32>
    %41 = vector.shape_cast %40 : vector<32xf32> to vector<32x1xf32>
    %cst_39 = arith.constant 2.560000e+02 : f32
    %42 = vector.broadcast %cst_39 : f32 to vector<32x1xf32>
    %43 = arith.divf %39, %42 : vector<32x1xf32>
    %cst_40 = arith.constant 2.560000e+02 : f32
    %44 = vector.broadcast %cst_40 : f32 to vector<32x1xf32>
    %45 = arith.divf %41, %44 : vector<32x1xf32>
    %46 = arith.mulf %43, %43 : vector<32x1xf32>
    %47 = arith.subf %45, %46 : vector<32x1xf32>
    %cst_41 = arith.constant 0.000000e+00 : f32
    %48 = vector.broadcast %cst_41 : f32 to vector<32x1xf32>
    %49 = arith.maximumf %47, %48 : vector<32x1xf32>
    %cst_42 = arith.constant 9.99999974E-6 : f32
    %50 = vector.broadcast %cst_42 : f32 to vector<32x1xf32>
    %51 = arith.addf %49, %50 : vector<32x1xf32>
    %52 = math.rsqrt %51 : vector<32x1xf32>
    %c0_43 = arith.constant 0 : index
    %c0_44 = arith.constant 0 : index
    %53 = vector.load %arg4[%c0_43, %c0_44] : memref<32x1xf32, #tpu.memory_space<vmem>>, vector<32x1xf32>
    %54 = arith.mulf %53, %52 : vector<32x1xf32>
    %c0_45 = arith.constant 0 : index
    %c0_46 = arith.constant 0 : index
    %55 = vector.load %arg5[%c0_45, %c0_46] : memref<32x1xf32, #tpu.memory_space<vmem>>, vector<32x1xf32>
    %56 = arith.mulf %43, %54 : vector<32x1xf32>
    %57 = arith.subf %55, %56 : vector<32x1xf32>
    %58 = vector.broadcast %54 : vector<32x1xf32> to vector<32x288xf32>
    %59 = arith.mulf %29, %58 : vector<32x288xf32>
    %60 = vector.broadcast %57 : vector<32x1xf32> to vector<32x288xf32>
    %61 = arith.addf %59, %60 : vector<32x288xf32>
    %cst_47 = arith.constant 0.000000e+00 : f32
    %62 = vector.broadcast %cst_47 : f32 to vector<32x288xf32>
    %63 = arith.maximumf %61, %62 : vector<32x288xf32>
    %c0_48 = arith.constant 0 : index
    %c0_49 = arith.constant 0 : index
    %c0_50 = arith.constant 0 : index
    %64 = vector.load %arg7[%c0_48, %c0_49, %c0_50] : memref<1x32x288xf32, #tpu.memory_space<vmem>>, vector<1x32x288xf32>
    %65 = vector.shape_cast %64 : vector<1x32x288xf32> to vector<32x288xf32>
    %66 = vector.shape_cast %63 : vector<32x288xf32> to vector<1x32x288xf32>
    tpu.vector_store %arg7[%c0_48, %c0_49, %c0_50], %66 {strides = array<i32>} : memref<1x32x288xf32, #tpu.memory_space<vmem>>, vector<1x32x288xf32>,
    return
  }
  func.func @transform_0(%arg0: i32, %arg1: i32) -> (i32, i32, i32) {
    %c0_i32 = arith.constant 0 : i32
    %c0_i32_0 = arith.constant 0 : i32
    %c0_i32_1 = arith.constant 0 : i32
    return %arg0, %c0_i32, %c0_i32_0 : i32, i32, i32
  }
  func.func @transform_1(%arg0: i32, %arg1: i32) -> (i32, i32) {
    %c0_i32 = arith.constant 0 : i32
    %c0_i32_0 = arith.constant 0 : i32
    return %arg1, %c0_i32 : i32, i32
  }
  func.func @transform_2(%arg0: i32, %arg1: i32) -> (i32, i32) {
    %c0_i32 = arith.constant 0 : i32
    %c0_i32_0 = arith.constant 0 : i32
    return %arg1, %c0_i32 : i32, i32
  }
  func.func @transform_3(%arg0: i32, %arg1: i32) -> (i32, i32) {
    %c0_i32 = arith.constant 0 : i32
    %c0_i32_0 = arith.constant 0 : i32
    return %arg1, %c0_i32 : i32, i32
  }
  func.func @transform_4(%arg0: i32, %arg1: i32) -> (i32, i32) {
    %c0_i32 = arith.constant 0 : i32
    %c0_i32_0 = arith.constant 0 : i32
    %c0_i32_1 = arith.constant 0 : i32
    return %c0_i32, %c0_i32_0 : i32, i32
  }
  func.func @transform_5(%arg0: i32, %arg1: i32) -> (i32, i32, i32) {
    %c0_i32 = arith.constant 0 : i32
    %c0_i32_0 = arith.constant 0 : i32
    return %arg0, %arg1, %c0_i32 : i32, i32, i32
  }
}

</mosaic_0001>

<bundles_post_ra>
// kernel: tpu_custom_call.1
= control target key start
LH: loop header
LB: loop body
LE: loop exit
PB: predicated region body
PF: predicated region fallthrough
CT: control target
= control target key end

     0   :  { %10 = vsyncpa [#allocation4], 0  ;;  %s1689_s0 = inlined_call_operand.vmem [shape: bf16[2,4,342], index: 0, kind: input, shape index: {}]   ;;  %s1690_s1 = inlined_call_operand.vmem [shape: bf16[32,36], index: 1, kind: input, shape index: {}]   ;;  %s1691_s2 = inlined_call_operand.vmem [shape: f32[32,1], index: 2, kind: input, shape index: {}]   ;;  %s1692_s3 = inlined_call_operand.vmem [shape: f32[32,1], index: 3, kind: input, shape index: {}]   ;;  %s1693_s4 = inlined_call_operand.vmem [shape: f32[1,288], index: 4, kind: input, shape index: {}]   ;;  %s1694_s5 = inlined_call_operand.hbm [shape: f32[2,32,288], index: 5, kind: output, shape index: {}]  }
   0x1   :  { %12 = vsyncpa [#allocation4 + $0x1], 0  ;;  %s1382_s18 = smov 0   ;;  %s1384_s19 = smov 0  }
   0x2   :  { %s1386_s20 = smov 0   ;;  %s1388_s21 = smov 0  }
   0x3   :  { %s1390_s22 = smov 0   ;;  %s1392_s23 = smov 0  }
   0x4 LB: > { %s1114_s24 = sadd.s32 4294967295, %s1337_s23   ;;  %s1115_s25 = sadd.s32 4294967294, %s1337_s23   ;;  %s1337_s23 = sphi %s1392_s23, %s18_s23   ;;  %s1333_s22 = sphi %s1390_s22, %s1701_s22   ;;  %s1329_s21 = sphi %s1388_s21, %s1700_s21   ;;  %s1325_s20 = sphi %s1386_s20, %s1699_s20   ;;  %s1321_s19 = sphi %s1384_s19, %s1698_s19   ;;  %s1317_s18 = sphi %s1382_s18, %s1697_s18  }
   0x5   : > { %s30_s26 = sadd.s32 1, %s1333_s22  ;;  %s164_s27 = sadd.s32 1, %s1325_s20 }
   0x6   : > { %p32_p0 = scmp.ge.s32.totalorder %s30_s26, 2  ;;  %p174_p1 = scmp.ne.s32.totalorder %s1325_s20, %s1321_s19 }
   0x7   : > { %p175_p2 = scmp.eq.s32.totalorder %s1114_s24, 1  ;;  %p180_p3 = scmp.ne.s32.totalorder %s1321_s19, %s1317_s18 }
   0x8   : > { %s1703_s26 = smov (%p32_p0, %s30_s26), 0  ;;  %p181_p5 = scmp.eq.s32.totalorder %s1115_s25, 1 }
   0x9   : > { %p1422_p4 = por %p175_p2, %p174_p1  ;;  %s159_s29 = ssub.s32 %s1333_s22, %s1703_s26 }
   0xa   : > { %p1121_p6 = scmp.ge.s32.totalorder %s1337_s23, 1  ;;  %p162_p7 = scmp.eq.s32.totalorder %s159_s29, 0 }
   0xb   : > { %p1429_p8 = por %p181_p5, %p180_p3  ;;  %p237_p9 = scmp.lt.s32.totalorder %s1337_s23, 3 }
   0xc   : > { %s1435_s6 = scalar_select %p162_p7, %s1325_s20, %s164_s27  }
   0xd   : > { %p238_p10 = pnand %p1121_p6, %p237_p9 }
   0xe   : > { %p280_p11 = scmp.lt.s32.totalorder (!%p238_p10), %s1329_s21, 1  ;;  %s1340_s12 = smov (!%p238_p10), 90  }
   0xf   : > { %241 = sbr.rel (%p238_p10) target bundleno = 722 (0x2d2), region = 40  ;;  %s1341_s13 = smov (!%p238_p10), 109  }
  0x10   : > { %s1342_s14 = smov (!%p238_p10), 92   ;;  %s1343_s15 = smov (!%p238_p10), 108  }
  0x11   : > { %s1344_s16 = smov (!%p238_p10), 91   ;;  %s1345_s17 = smov (!%p238_p10), 127  }
  0x12   : > { %s1346_s24 = smov (!%p238_p10), 126   ;;  %s1347_s29 = smov (!%p238_p10), 110  }
  0x14   : > { %v318_v0 = vlaneseq  ;;  %v1339_v1 = vmov 1983009808   ;;  %s281_s7 = scalar_select %p280_p11, %s1329_s21, 1  ;;  %vm325_vm0 = vcmask 254976   ;;  %v1479_v41 = vld [vmem:[%s1690_s1] sm:$0xff]   ;;  %vm633_vm1 = vcmask 293888  }
  0x15   : > { %v316_v2 = vunpack.c.l.s4 %v1339_v1  ;;  %1154 = vmatprep.mubr.msk.bf16.mxu1 %vm633_vm1, %v1479_v41  ;;  %v1348_v42 = vmov 0   ;;  %vm357_vm2 = vcmask 257026   ;;  %vm350_vm3 = vcmask 1043456  }
  0x16   : > { %v1439_v3 = vshrl.u32 %v318_v0, 7  ;;  %s1160_s8 = smul.u32 6, %s281_s7  ;;  %682 = vmatprep.mubr.bf16.mxu0 %v1348_v42  ;;  %1229 = vset.pattern.permute.xlu1 %v1348_v42  ;;  %vm563_vm4 = vcmask 736256   ;;  %vm443_vm5 = vcmask 891904   ;;  %vm473_vm6 = vcmask 883712  }
  0x17   : > { %v317_v4 = vunpack.c.0.s8 %v316_v2  ;;  %1230 = vset.pattern.permute.xlu0 %v1348_v42  ;;  %vm503_vm7 = vcmask 752640   ;;  %vm640_vm8 = vcmask 1041408   ;;  %vm533_vm9 = vcmask 744448  }
  0x18   : > { %s1447_s11 = scalar_lea.vmem %s1689_s0, %s1160_s8  ;;  %vm352_vm10 = vcmask 1039360   ;;  %vm383_vm11 = vcmask 1031168   ;;  %vm413_vm12 = vcmask 900096   ;;  %vm782_vm13 = vcmask 261120  }
  0x19   : > { %v1442_v5 = vsub.s32 %v317_v4, %v1439_v3  ;;  %v539_v6 = vld [vmem:[%s1447_s11] sm:$0x3f] }
  0x1a   : > { %v419_v7 = vld [vmem:[%s1447_s11] sm:$0x3f]  ;;  %v541_v12 = vcombine.high %v539_v6, %v539_v6 }
  0x1b   : > { %v479_v8 = vld [vmem:[%s1447_s11] sm:$0x3f]  ;;  %v548_v9 = vrot.slane %v539_v6, %v1442_v5  ;;  %v428_v10 = vrot.slane %v419_v7, %v1442_v5  ;;  %v421_v14 = vcombine.high %v419_v7, %v419_v7 }
  0x1c   : > { %v449_v11 = vld [vmem:[%s1447_s11] sm:$0x3f]  ;;  %v488_v15 = vrot.slane %v479_v8, %v1442_v5  ;;  %v555_v19 = vrot.slane %v541_v12, %v1442_v5  ;;  %v481_v21 = vcombine.high %v479_v8, %v479_v8 }
  0x1d   : > { %v305_v13 = vld [vmem:[%s1447_s11] sm:$0x3f]  ;;  %556 = vrot.lane.b32.xlu0 %v548_v9, %s1340_s12  ;;  %436 = vrot.lane.b32.xlu1 %v428_v10, %s1341_s13  ;;  %v465_v16 = vrot.slane %v449_v11, %v1442_v5  ;;  %v451_v17 = vcombine.low %v449_v11, %v449_v11  ;;  %v435_v20 = vrot.slane %v421_v14, %v1442_v5 }
  0x1e   : > { %1123 = vst.sshfl [vmem:[#allocation2] sm:$0xf pattern:$0x76325410] %v305_v13  ;;  %v307_v18 = vcombine.high %v305_v13, %v305_v13  ;;  %v509_v22 = vld [vmem:[%s1447_s11] sm:$0x3f]  ;;  %v495_v25 = vrot.slane %v481_v21, %v1442_v5 }
  0x1f   : > { %v458_v24 = vrot.slane %v451_v17, %v1442_v5  ;;  %v511_v26 = vcombine.low %v509_v22, %v509_v22  ;;  %v327_v27 = vld [vmem:[%s1447_s11] sm:$0x3f]  ;;  %v525_v29 = vrot.slane %v509_v22, %v1442_v5 }
  0x20   : > { %v321_v23 = vrot.slane %v307_v18, %v1442_v5  ;;  %v329_v30 = vcombine.low %v327_v27, %v327_v27  ;;  %v359_v31 = vld [vmem:[%s1447_s11] sm:$0x3f]  ;;  %v343_v32 = vrot.slane %v327_v27, %v1442_v5 }
  0x21   : > { %496 = vrot.lane.b32.xlu0 %v488_v15, %s1342_s14  ;;  %468 = vrot.lane.b32.xlu1 %v465_v16, %s1343_s15  ;;  %v518_v28 = vrot.slane %v511_v26, %v1442_v5  ;;  %v361_v34 = vcombine.high %v359_v31, %v359_v31  ;;  %v389_v35 = vld [vmem:[%s1447_s11] sm:$0x3f]  ;;  %v368_v37 = vrot.slane %v359_v31, %v1442_v5 }
  0x22   : > { %326 = vst.msk [vmem:[#allocation2 + $0x8] sm:$0x3] %vm325_vm0, %v321_v23  ;;  %v336_v33 = vrot.slane %v329_v30, %v1442_v5  ;;  %v391_v38 = vcombine.low %v389_v35, %v389_v35  ;;  %v405_v39 = vrot.slane %v389_v35, %v1442_v5 }
  0x23   : > { %v375_v36 = vrot.slane %v361_v34, %v1442_v5 }
  0x24   : > { %v398_v40 = vrot.slane %v391_v38, %v1442_v5  ;;  %v1251_v38 = vld [vmem:[%s1690_s1 + $0x8] sm:$0xff]  }
  0x25   : > { %558 = vrot.lane.b32.xlu0 %v555_v19, %s1340_s12  ;;  %438 = vrot.lane.b32.xlu1 %v435_v20, %s1341_s13  ;;  %s277_s12 = sand.u32 1, %s1321_s19  }
  0x26   : > { %s1159_s13 = smul.u32 96, %s277_s12  ;;  %s1644_s25 = scalar_lea.sflag [#allocation4], %s277_s12 }
  0x29   : > { %466 = vrot.lane.b32.xlu0 %v458_v24, %s1343_s15  ;;  %498 = vrot.lane.b32.xlu1 %v495_v25, %s1342_s14  ;;  %s1606_s14 = scalar_lea.vmem [#allocation3], %s1159_s13  ;;  %s1161_s15 = smul.u32 1536, %s1329_s21 }
  0x2d   : > { %526 = vrot.lane.b32.xlu0 %v518_v28, %s1344_s16  ;;  %528 = vrot.lane.b32.xlu1 %v525_v29, %s1344_s16  ;;  %s996_s16 = sshll.u32 %s1606_s14, 4  ;;  %s1636_s16 = int_to_ptr.vmem [resolvable:$true] %s996_s16 }
  0x2e   : > { %s1261_s27 = scalar_lea.vmem %s1636_s16, 1536 }
  0x2f   : > { %p1262_p12 = scmp.ne.s32.totalorder %s1636_s16, %s1261_s27 }
  0x31   : > { %346 = vrot.lane.b32.xlu1 %v343_v32, %s1345_s17  ;;  %344 = vrot.lane.b32.xlu0 %v336_v33, %s1345_s17  ;;  %p1263_p13 = pnand %p1262_p12, %p1422_p4 }
  0x33   : > { %p1264_p0 = pneg %p1263_p13 }
  0x35   : > { %378 = vrot.lane.b32.xlu1 %v375_v36, %s1346_s24  ;;  %376 = vrot.lane.b32.xlu0 %v368_v37, %s1346_s24  ;;  %s1634_s24 = scalar_lea.hbm %s1694_s5, %s1161_s15 }
  0x39   : > { %408 = vrot.lane.b32.xlu1 %v405_v39, %s1347_s29  ;;  %406 = vrot.lane.b32.xlu0 %v398_v40, %s1347_s29  ;;  %s1349_s29 = smov [#allocation3]  }
  0x3a   : > { %s1265_s7 = sshll.u32 %s1349_s29, 4  ;;  %s1266_s7 = int_to_ptr.vmem [resolvable:$false] %s1265_s7 }
  0x3b   : > { %s1267_s8 = scalar_lea.vmem %s1266_s7, 3072  ;;  %p1268_p1 = scmp.lt.s32.totalorder %s1636_s16, %s1266_s7 }
  0x3c   : > { %p1269_p2 = scmp.lt.s32.totalorder %s1267_s8, %s1261_s27 }
  0x3e   : > { %p1270_p3 = por %p1269_p2, %p1268_p1 }
  0x40   : > { %p1271_p5 = pnand %p1270_p3, %p1264_p0 }
  0x8f   : > { %v557_v43 = vpop.permute.xlu0 %556  ;;  %v437_v44 = vpop.permute.xlu1 %436 }
  0x90   : > { %v560_v49 = vrot.slane %v557_v43, 4  ;;  %v440_v50 = vrot.slane %v437_v44, 4 }
  0x93   : > { %v497_v45 = vpop.permute.xlu0 %496  ;;  %v469_v46 = vpop.permute.xlu1 %468 }
  0x94   : > { %478 = vst.msk [vmem:[#allocation2 + $0x20] sm:$0xc] %vm357_vm2, %v469_v46  ;;  %v500_v59 = vrot.slane %v497_v45, 4  ;;  %v471_v60 = vrot.slane %v469_v46, 4  ;;  %v760_v46 = vsub.s32 1, %v1439_v3 }
  0x97   : > { %v559_v47 = vpop.permute.xlu0 %558  ;;  %v439_v48 = vpop.permute.xlu1 %438 }
  0x98   : > { %v561_v51 = vrot.slane %v559_v47, 4  ;;  %568 = vst.msk [vmem:[#allocation2 + $0x38] sm:$0x3] %vm325_vm0, %v559_v47  ;;  %v441_v52 = vrot.slane %v439_v48, 4  ;;  %448 = vst.msk [vmem:[#allocation2 + $0x20] sm:$0x3] %vm325_vm0, %v439_v48 }
  0x9a   : > { %v562_v53 = vsel %vm350_vm3, %v560_v49, %v561_v51  ;;  %v442_v54 = vsel %vm350_vm3, %v440_v50, %v441_v52 }
  0x9b   : > { %v564_v55 = vsel %vm563_vm4, %v557_v43, %v562_v53  ;;  %v444_v56 = vsel %vm443_vm5, %v437_v44, %v442_v54  ;;  %v467_v57 = vpop.permute.xlu0 %466  ;;  %v499_v58 = vpop.permute.xlu1 %498  ;;  %v764_v43 = vsub.s32 2, %v1439_v3  ;;  %v752_v44 = vld [vmem:[%s1693_s4] sm:$0x7] }
  0x9c   : > { %567 = vst [vmem:[#allocation2 + $0x30] sm:$0x33] %v564_v55  ;;  %447 = vst [vmem:[#allocation2 + $0x18] sm:$0x33] %v444_v56  ;;  %v470_v61 = vrot.slane %v467_v57, 4  ;;  %v501_v62 = vrot.slane %v499_v58, 4 }
  0x9d   : > { %508 = vst.msk [vmem:[#allocation2 + $0x2c] sm:$0x3] %vm325_vm0, %v499_v58  ;;  %v765_v48 = vrot.slane %v752_v44, %v764_v43 }
  0x9e   : > { %v472_v63 = vsel %vm350_vm3, %v470_v61, %v471_v60  ;;  %v502_v0 = vsel %vm350_vm3, %v500_v59, %v501_v62 }
  0x9f   : > { %v474_v1 = vsel %vm473_vm6, %v467_v57, %v472_v63  ;;  %v504_v2 = vsel %vm503_vm7, %v497_v45, %v502_v0  ;;  %v527_v4 = vpop.permute.xlu0 %526  ;;  %v529_v5 = vpop.permute.xlu1 %528  ;;  %v1240_v6 = vld [vmem:[#allocation2 + $0x38] ss:$0 sps:$4 sm:$0x33]   ;;  %v756_v45 = vsub.s32 0, %v1439_v3 }
  0xa0   : > { %477 = vst [vmem:[#allocation2 + $0x18] sm:$0xcc] %v474_v1  ;;  %507 = vst [vmem:[#allocation2 + $0x24] sm:$0x33] %v504_v2  ;;  %v530_v7 = vrot.slane %v527_v4, 4  ;;  %v531_v8 = vrot.slane %v529_v5, 4  ;;  %1158 = vmatprep.subr.msk.bf16.mxu1 %vm640_vm8, %v1240_v6 }
  0xa1   : > { %538 = vst.msk [vmem:[#allocation2 + $0x2c] sm:$0xc] %vm357_vm2, %v529_v5  ;;  %v648_v9 = vsel %vm640_vm8, %v1240_v6, 0  ;;  %v757_v49 = vrot.slane %v752_v44, %v756_v45 }
  0xa2   : > { %v532_v10 = vsel %vm350_vm3, %v530_v7, %v531_v8  ;;  %1149 = vmatpush3.bf16.msra.mxu1 %v648_v9 }
  0xa3   : > { %v534_v11 = vsel %vm533_vm9, %v527_v4, %v532_v10  ;;  %v347_v12 = vpop.permute.xlu1 %346  ;;  %v345_v13 = vpop.permute.xlu0 %344  ;;  %v581_v14 = vld [vmem:[#allocation2 + $0x30] sm:$0x33] }
  0xa4   : > { %537 = vst [vmem:[#allocation2 + $0x24] sm:$0xcc] %v534_v11  ;;  %v349_v15 = vrot.slane %v347_v12, 4  ;;  %358 = vst.msk [vmem:[#allocation2 + $0x8] sm:$0xc] %vm357_vm2, %v347_v12  ;;  %v348_v16 = vrot.slane %v345_v13, 4  ;;  %v1133_v17 = vcombine.high %v581_v14, %v581_v14  ;;  %v1132_v18 = vcombine.low %v581_v14, %v581_v14 }
  0xa6   : > { %v351_v19 = vsel %vm350_vm3, %v348_v16, %v349_v15  ;;  %1135 = vmatprep.subr.msk.bf16.mxu0 %vm640_vm8, %v1133_v17  ;;  %v642_v20 = vsel %vm640_vm8, %v1132_v18, 0 }
  0xa7   : > { %v353_v21 = vsel %vm352_vm10, %v345_v13, %v351_v19  ;;  %661 = vmatpush1.bf16.msra.mxu0 %v642_v20  ;;  %v379_v22 = vpop.permute.xlu1 %378  ;;  %v377_v23 = vpop.permute.xlu0 %376 }
  0xa8   : > { %v1243_v24 = vld [vmem:[#allocation2 + $0x20] ss:$12 sps:$4 sm:$0xff]   ;;  %356 = vst [vmem:[#allocation2] sm:$0xcc] %v353_v21  ;;  %v381_v25 = vrot.slane %v379_v22, 4  ;;  %v380_v26 = vrot.slane %v377_v23, 4 }
  0xa9   : > { %388 = vst.msk [vmem:[#allocation2 + $0x14] sm:$0x3] %vm325_vm0, %v379_v22  ;;  %1150 = vmatprep.subr.bf16.mxu1 %v1243_v24 }
  0xaa   : > { %v382_v27 = vsel %vm350_vm3, %v380_v26, %v381_v25  ;;  %1151 = vmatpush3.bf16.msra.mxu1 %v1243_v24 }
  0xab   : > { %v384_v28 = vsel %vm383_vm11, %v377_v23, %v382_v27  ;;  %v409_v29 = vpop.permute.xlu1 %408  ;;  %v407_v30 = vpop.permute.xlu0 %406  ;;  %v1244_v31 = vld [vmem:[#allocation2 + $0x1c] ss:$12 sps:$4 sm:$0xff]   ;;  %v1246_v32 = vld [vmem:[#allocation2 + $0x18] ss:$12 sps:$4 sm:$0xff]  }
  0xac   : > { %387 = vst [vmem:[#allocation2 + $0xc] sm:$0x33] %v384_v28  ;;  %v411_v33 = vrot.slane %v409_v29, 4  ;;  %418 = vst.msk [vmem:[#allocation2 + $0x14] sm:$0xc] %vm357_vm2, %v409_v29  ;;  %v410_v34 = vrot.slane %v407_v30, 4  ;;  %662 = vmatprep.subr.bf16.mxu0 %v1244_v31 }
  0xad   : > { %663 = vmatpush1.bf16.msra.mxu0 %v1246_v32 }
  0xae   : > { %v412_v35 = vsel %vm350_vm3, %v410_v34, %v411_v33 }
  0xaf   : > { %v414_v36 = vsel %vm413_vm12, %v407_v30, %v412_v35 }
  0xb0   : > { %417 = vst [vmem:[#allocation2 + $0xc] sm:$0xcc] %v414_v36 }
  0xb3   : > { %v1247_v37 = vld [vmem:[#allocation2 + $0x8] ss:$12 sps:$4 sm:$0xff]  }
  0xb4   : > { %1152 = vmatprep.subr.bf16.mxu1 %v1247_v37 }
  0xb5   : > { %1153 = vmatpush3.bf16.msra.mxu1 %v1247_v37 }
  0xb7   : > { %v1249_v39 = vld [vmem:[#allocation2 + $0x4] ss:$12 sps:$4 sm:$0xff]   ;;  %v1252_v40 = vld [vmem:[#allocation2] ss:$12 sps:$4 sm:$0xff]  }
  0xb8   : > { %664 = vmatprep.subr.bf16.mxu0 %v1249_v39  ;;  %1155 = vmatmul.mubr.msk.bf16.vlgmr.msra.gmra.mxu1 %vm633_vm1, %v1251_v38 }
  0xb9   : > { %665 = vmatpush1.bf16.msra.mxu0 %v1252_v40 }
  0xbc   : > { %1136 = vmatmul.mubr.msk.bf16.vlgmr.msra.gmra.mxu0 %vm633_vm1, %v1479_v41  ;;  %v761_v41 = vrot.slane %v752_v44, %v760_v46 }
  0xbd   : > { %692 = vmatprep.mubr.bf16.mxu0 %v1348_v42 }
  0xc4   : > { %1137 = vmatmul.mubr.msk.bf16.gmra.mxu0 %vm633_vm1, %v1251_v38 }
 0x178   : > { %v1520_v47 = vpop.f32.mrf.mxu1 }
 0x179   : > { %v777_v5 = vmul.f32 %v1520_v47, %v765_v48 }
 0x17a   : > { %v1522_v50 = vpop.f32.mrf.mxu1 }
 0x17b   : > { %v771_v42 = vmul.f32 %v765_v48, %v1522_v50  ;;  %v810_v17 = vmul.f32 %v1520_v47, %v777_v5  ;;  %v793_v30 = vsel %vm782_vm13, %v777_v5, 0.0 }
 0x17c   : > { %v1525_v51 = vpop.f32.mrf.mxu0  ;;  %v1527_v52 = vpop.f32.mrf.mxu1 }
 0x17d   : > { %v769_v53 = vmul.f32 %v757_v49, %v1525_v51  ;;  %v804_v56 = vmul.f32 %v771_v42, %v1522_v50  ;;  %v783_v0 = vsel %vm782_vm13, %v771_v42, 0.0  ;;  %v780_v29 = vmul.f32 %v1527_v52, %v765_v48 }
 0x17e   : > { %v1530_v54 = vpop.f32.mrf.mxu0  ;;  %v1532_v55 = vpop.f32.mrf.mxu1  ;;  %v825_v34 = vsel %vm782_vm13, %v810_v17, 0.0 }
 0x17f   : > { %v770_v3 = vmul.f32 %v761_v41, %v1530_v54  ;;  %v774_v57 = vmul.f32 %v765_v48, %v1532_v55  ;;  %v802_v59 = vmul.f32 %v769_v53, %v1525_v51  ;;  %v815_v8 = vsel %vm782_vm13, %v804_v56, 0.0 }
 0x180   : > { %v1537_v58 = vpop.f32.mrf.mxu0  ;;  %v813_v38 = vmul.f32 %v1527_v52, %v780_v29  ;;  %v798_v39 = vsel %vm782_vm13, %v780_v29, 0.0  ;;  %v872_v29 = vld [vmem:[%s1691_s2 + $0x8] sm:$0xff] }
 0x181   : > { %v803_v60 = vmul.f32 %v770_v3, %v1530_v54  ;;  %v772_v61 = vmul.f32 %v757_v49, %v1537_v58  ;;  %v781_v62 = vadd.f32 %v770_v3, %v769_v53  ;;  %v807_v6 = vmul.f32 %v774_v57, %v1532_v55 }
 0x182   : > { %v1542_v63 = vpop.f32.mrf.mxu0  ;;  %v788_v20 = vsel %vm782_vm13, %v774_v57, 0.0  ;;  %v830_v44 = vsel %vm782_vm13, %v813_v38, 0.0 }
 0x183   : > { %v773_v1 = vmul.f32 %v761_v41, %v1542_v63  ;;  %v784_v2 = vadd.f32 %v783_v0, %v781_v62  ;;  %v814_v4 = vadd.f32 %v803_v60, %v802_v59  ;;  %v805_v9 = vmul.f32 %v772_v61, %v1537_v58 }
 0x184   : > { %v1548_v7 = vpop.f32.mrf.mxu0  ;;  %v820_v19 = vsel %vm782_vm13, %v807_v6, 0.0 }
 0x185   : > { %v806_v10 = vmul.f32 %v773_v1, %v1542_v63  ;;  %785 = vadd.xlane.f32.xlu0 %v784_v2  ;;  %v816_v11 = vadd.f32 %v815_v8, %v814_v4  ;;  %v787_v12 = vadd.f32 %v773_v1, %v772_v61  ;;  %v775_v13 = vmul.f32 %v757_v49, %v1548_v7 }
 0x186   : > { %v1554_v14 = vpop.f32.mrf.mxu0 }
 0x187   : > { %v776_v15 = vmul.f32 %v761_v41, %v1554_v14  ;;  %817 = vadd.xlane.f32.xlu1 %v816_v11  ;;  %v819_v16 = vadd.f32 %v806_v10, %v805_v9  ;;  %v789_v23 = vadd.f32 %v788_v20, %v787_v12  ;;  %v808_v25 = vmul.f32 %v775_v13, %v1548_v7 }
 0x188   : > { %v1558_v18 = vpop.f32.mrf.mxu0 }
 0x189   : > { %v809_v21 = vmul.f32 %v776_v15, %v1554_v14  ;;  %v821_v22 = vadd.f32 %v820_v19, %v819_v16  ;;  %v792_v24 = vadd.f32 %v776_v15, %v775_v13  ;;  %v778_v27 = vmul.f32 %v757_v49, %v1558_v18 }
 0x18a   : > { %v1564_v26 = vpop.f32.mrf.mxu0 }
 0x18b   : > { %v779_v28 = vmul.f32 %v761_v41, %v1564_v26  ;;  %822 = vadd.xlane.f32.xlu0 %v821_v22  ;;  %790 = vadd.xlane.f32.xlu1 %v789_v23  ;;  %v824_v31 = vadd.f32 %v809_v21, %v808_v25  ;;  %v794_v33 = vadd.f32 %v793_v30, %v792_v24  ;;  %v871_v21 = vld [vmem:[%s1691_s2] sm:$0xff] }
 0x18c   : > { %v811_v37 = vmul.f32 %v778_v27, %v1558_v18 }
 0x18d   : > { %v812_v32 = vmul.f32 %v779_v28, %v1564_v26  ;;  %v797_v35 = vadd.f32 %v779_v28, %v778_v27  ;;  %v826_v36 = vadd.f32 %v825_v34, %v824_v31  ;;  %v879_v27 = vld [vmem:[%s1692_s3] sm:$0xff] }
 0x18f   : > { %795 = vadd.xlane.f32.xlu0 %v794_v33  ;;  %827 = vadd.xlane.f32.xlu1 %v826_v36  ;;  %v799_v40 = vadd.f32 %v798_v39, %v797_v35  ;;  %v829_v43 = vadd.f32 %v812_v32, %v811_v37  ;;  %v873_v33 = vld [vmem:[%s1691_s2 + $0x10] sm:$0xff]  ;;  %v880_v37 = vld [vmem:[%s1692_s3 + $0x8] sm:$0xff] }
 0x191   : > { %v831_v45 = vadd.f32 %v830_v44, %v829_v43 }
 0x193   : > { %800 = vadd.xlane.f32.xlu0 %v799_v40  ;;  %v874_v40 = vld [vmem:[%s1691_s2 + $0x18] sm:$0xff] }
 0x197   : > { %832 = vadd.xlane.f32.xlu0 %v831_v45  ;;  %v881_v45 = vld [vmem:[%s1692_s3 + $0x10] sm:$0xff] }
 0x20e   : > { %v786_v46 = vpop.xlane.xlu0 %785 }
 0x20f   : > { %v843_v48 = vmul.f32 0.00390625, %v786_v46 }
 0x210   : > { %v818_v49 = vpop.xlane.xlu1 %817 }
 0x211   : > { %v851_v41 = vmul.f32 %v843_v48, %v843_v48  ;;  %v847_v42 = vmul.f32 0.00390625, %v818_v49  ;;  %v882_v49 = vld [vmem:[%s1692_s3 + $0x18] sm:$0xff] }
 0x213   : > { %v855_v53 = vsub.f32 %v847_v42, %v851_v41 }
 0x214   : > { %v823_v3 = vpop.xlane.xlu0 %822  ;;  %v791_v56 = vpop.xlane.xlu1 %790 }
 0x215   : > { %v859_v57 = vmax.f32 %v855_v53, 0.0  ;;  %v844_v59 = vmul.f32 0.00390625, %v791_v56  ;;  %v848_v61 = vmul.f32 0.00390625, %v823_v3 }
 0x217   : > { %v863_v60 = vadd.f32 1e-05, %v859_v57  ;;  %v852_v62 = vmul.f32 %v844_v59, %v844_v59 }
 0x218   : > { %v796_v0 = vpop.xlane.xlu0 %795  ;;  %v828_v4 = vpop.xlane.xlu1 %827 }
 0x219   : > { %1253 = vrsqrt.f32 %v863_v60  ;;  %v856_v1 = vsub.f32 %v848_v61, %v852_v62  ;;  %v845_v2 = vmul.f32 0.00390625, %v796_v0  ;;  %v849_v8 = vmul.f32 0.00390625, %v828_v4 }
 0x21b   : > { %v860_v5 = vmax.f32 %v856_v1, 0.0  ;;  %v853_v6 = vmul.f32 %v845_v2, %v845_v2 }
 0x21c   : > { %v801_v9 = vpop.xlane.xlu0 %800 }
 0x21d   : > { %v864_v10 = vadd.f32 1e-05, %v860_v5  ;;  %v857_v11 = vsub.f32 %v849_v8, %v853_v6  ;;  %v846_v12 = vmul.f32 0.00390625, %v801_v9 }
 0x21f   : > { %1255 = vrsqrt.f32 %v864_v10  ;;  %v861_v13 = vmax.f32 %v857_v11, 0.0  ;;  %v854_v17 = vmul.f32 %v846_v12, %v846_v12 }
 0x220   : > { %v833_v15 = vpop.xlane.xlu0 %832 }
 0x221   : > { %v865_v16 = vadd.f32 1e-05, %v861_v13  ;;  %v850_v19 = vmul.f32 0.00390625, %v833_v15 }
 0x223   : > { %1257 = vrsqrt.f32 %v865_v16  ;;  %v858_v20 = vsub.f32 %v850_v19, %v854_v17 }
 0x225   : > { %v862_v22 = vmax.f32 %v858_v20, 0.0 }
 0x226   : > { %v1254_v23 = vpop.eup %1253 }
 0x227   : > { %v866_v24 = vadd.f32 1e-05, %v862_v22  ;;  %v875_v25 = vmul.f32 %v1254_v23, %v871_v21 }
 0x229   : > { %1259 = vrsqrt.f32 %v866_v24  ;;  %893 = vperm.xlu1 %1229, %v875_v25   ;;  %v883_v28 = vmul.f32 %v875_v25, %v843_v48 }
 0x22b   : > { %v887_v30 = vsub.f32 %v879_v27, %v883_v28 }
 0x22c   : > { %v1256_v31 = vpop.eup %1255 }
 0x22d   : > { %v876_v32 = vmul.f32 %v1256_v31, %v872_v29  ;;  %925 = vperm.xlu1 %1229, %v887_v30  }
 0x22f   : > { %898 = vperm.xlu0 %1230, %v876_v32   ;;  %v884_v35 = vmul.f32 %v876_v32, %v844_v59 }
 0x230   : > { %v1258_v34 = vpop.eup %1257 }
 0x231   : > { %v877_v36 = vmul.f32 %v1258_v34, %v873_v33  ;;  %v888_v38 = vsub.f32 %v880_v37, %v884_v35 }
 0x233   : > { %903 = vperm.xlu1 %1229, %v877_v36   ;;  %v885_v44 = vmul.f32 %v877_v36, %v845_v2 }
 0x235   : > { %v889_v46 = vsub.f32 %v881_v45, %v885_v44 }
 0x236   : > { %v1260_v39 = vpop.eup %1259 }
 0x237   : > { %930 = vperm.xlu1 %1229, %v888_v38   ;;  %v878_v43 = vmul.f32 %v1260_v39, %v874_v40 }
 0x239   : > { %v886_v48 = vmul.f32 %v878_v43, %v846_v12 }
 0x23b   : > { %908 = vperm.xlu1 %1229, %v878_v43   ;;  %v890_v41 = vsub.f32 %v882_v49, %v886_v48 }
 0x23f   : > { %935 = vperm.xlu1 %1229, %v889_v46  }
 0x243   : > { %940 = vperm.xlu1 %1229, %v890_v41  }
 0x2a4   : > { %v894_v42 = vpop.permute.xlu1 %893 }
 0x2a5   : > { %v911_v53 = vmul.f32 %v894_v42, %v1525_v51  ;;  %v912_v3 = vmul.f32 %v894_v42, %v1530_v54  ;;  %v913_v56 = vmul.f32 %v894_v42, %v1522_v50 }
 0x2a8   : > { %v926_v57 = vpop.permute.xlu1 %925 }
 0x2a9   : > { %v943_v59 = vadd.f32 %v926_v57, %v911_v53  ;;  %v944_v60 = vadd.f32 %v926_v57, %v912_v3  ;;  %v945_v61 = vadd.f32 %v926_v57, %v913_v56 }
 0x2aa   : > { %v899_v50 = vpop.permute.xlu0 %898 }
 0x2ab   : > { %v955_v62 = vmax.f32 %v943_v59, 0.0  ;;  %v956_v0 = vmax.f32 %v944_v60, 0.0  ;;  %v957_v1 = vmax.f32 %v945_v61, 0.0  ;;  %v914_v54 = vmul.f32 %v899_v50, %v1537_v58 }
 0x2ac   : > { %v915_v2 = vmul.f32 %v899_v50, %v1542_v63  ;;  %v916_v4 = vmul.f32 %v899_v50, %v1532_v55 }
 0x2ad   : > { %967 = vst [vmem:[%s1606_s14] sm:$0xff] %v955_v62  ;;  %968 = vst [vmem:[%s1606_s14 + $0x8] sm:$0xff] %v956_v0 }
 0x2ae   : > { %969 = vst.msk [vmem:[%s1606_s14 + $0x10] sm:$0xff] %vm782_vm13, %v957_v1  ;;  %v904_v51 = vpop.permute.xlu1 %903 }
 0x2af   : > { %v917_v58 = vmul.f32 %v904_v51, %v1548_v7  ;;  %v918_v63 = vmul.f32 %v904_v51, %v1554_v14  ;;  %v919_v55 = vmul.f32 %v1520_v47, %v904_v51 }
 0x2b2   : > { %v931_v5 = vpop.permute.xlu1 %930 }
 0x2b3   : > { %v946_v6 = vadd.f32 %v931_v5, %v914_v54  ;;  %v947_v8 = vadd.f32 %v931_v5, %v915_v2  ;;  %v948_v9 = vadd.f32 %v931_v5, %v916_v4 }
 0x2b5   : > { %v958_v10 = vmax.f32 %v946_v6, 0.0  ;;  %v959_v11 = vmax.f32 %v947_v8, 0.0  ;;  %v960_v12 = vmax.f32 %v948_v9, 0.0 }
 0x2b6   : > { %v909_v13 = vpop.permute.xlu1 %908 }
 0x2b7   : > { %970 = vst [vmem:[%s1606_s14 + $0x18] sm:$0xff] %v958_v10  ;;  %971 = vst [vmem:[%s1606_s14 + $0x20] sm:$0xff] %v959_v11  ;;  %v920_v20 = vmul.f32 %v909_v13, %v1558_v18  ;;  %v921_v21 = vmul.f32 %v909_v13, %v1564_v26  ;;  %v922_v22 = vmul.f32 %v1527_v52, %v909_v13 }
 0x2b8   : > { %972 = vst.msk [vmem:[%s1606_s14 + $0x28] sm:$0xff] %vm782_vm13, %v960_v12 }
 0x2ba   : > { %v936_v15 = vpop.permute.xlu1 %935 }
 0x2bb   : > { %v949_v16 = vadd.f32 %v936_v15, %v917_v58  ;;  %v950_v17 = vadd.f32 %v936_v15, %v918_v63  ;;  %v951_v19 = vadd.f32 %v936_v15, %v919_v55 }
 0x2bd   : > { %v961_v23 = vmax.f32 %v949_v16, 0.0  ;;  %v962_v7 = vmax.f32 %v950_v17, 0.0  ;;  %v963_v14 = vmax.f32 %v951_v19, 0.0 }
 0x2be   : > { %v941_v24 = vpop.permute.xlu1 %940 }
 0x2bf   : > { %973 = vst [vmem:[%s1606_s14 + $0x30] sm:$0xff] %v961_v23  ;;  %974 = vst [vmem:[%s1606_s14 + $0x38] sm:$0xff] %v962_v7  ;;  %v952_v47 = vadd.f32 %v941_v24, %v920_v20  ;;  %v953_v18 = vadd.f32 %v941_v24, %v921_v21  ;;  %v954_v26 = vadd.f32 %v941_v24, %v922_v22 }
 0x2c0   : > { %975 = vst.msk [vmem:[%s1606_s14 + $0x40] sm:$0xff] %vm782_vm13, %v963_v14 }
 0x2c1   : > { %v964_v52 = vmax.f32 %v952_v47, 0.0  ;;  %v965_v25 = vmax.f32 %v953_v18, 0.0  ;;  %v966_v27 = vmax.f32 %v954_v26, 0.0 }
 0x2c3   : > { %976 = vst [vmem:[%s1606_s14 + $0x48] sm:$0xff] %v964_v52  ;;  %977 = vst [vmem:[%s1606_s14 + $0x50] sm:$0xff] %v965_v25 }
 0x2c4   : > { %978 = vst.msk [vmem:[%s1606_s14 + $0x58] sm:$0xff] %vm782_vm13, %v966_v27 }
 0x2c5   : > { %1274 = shalt.err (!%p1271_p5)
}
 0x2c6   : > { %s1275_s9 = scalar_lea.hbm %s1634_s24, 1536  ;;  %s1279_s12 = scalar_lea.hbm %s1694_s5, 3072 }
 0x2c7   : > { %p1276_p6 = scmp.ne.s32.totalorder %s1634_s24, %s1275_s9  ;;  %p1280_p10 = scmp.lt.s32.totalorder %s1634_s24, %s1694_s5 }
 0x2c8   : > { %p1281_p11 = scmp.lt.s32.totalorder %s1279_s12, %s1275_s9 }
 0x2c9   : > { %p1277_p7 = pnand %p1276_p6, %p1422_p4 }
 0x2ca   : > { %p1282_p12 = por %p1281_p11, %p1280_p10 }
 0x2cb   : > { %p1278_p9 = pneg %p1277_p7 }
 0x2cd   : > { %p1283_p13 = pnand %p1282_p12, %p1278_p9 }
 0x2cf   : > { %1286 = shalt.err (!%p1283_p13)
}
 0x2d0   : > { %s1350_s15 = smov 384   ;;  %s1351_s21 = smov 24  }
 0x2d1   : > { %1162 = dma.vmem_to_hbm [thread:$0]  (%p1422_p4), %s1636_s16, 1536, %s1634_s24, %s1644_s25, %s1350_s15, %s1350_s15, %s1351_s21  }
 0x2d2 PF: > { %p1168_p0 = scmp.ge.s32.totalorder %s1337_s23, 2  ;;  %s1011_s17 = sand.u32 1, %s1317_s18  }
 0x2d3   : > { %s1012_s27 = scalar_lea.sflag [#allocation4], %s1011_s17 }
 0x2d4   : > { %p1165_p1 = pnand %p1168_p0, %p1429_p8 }
 0x2d6   : > { %p1166_p2 = pneg %p1165_p1 }
 0x2d8   : > { %1312 = dma.done.wait (%p1166_p2), %s1012_s27, 1536  }
 0x2d9   : > { %1314 = vsyncadd (%p1166_p2), %s1012_s27, 4294965760  ;;  %s18_s23 = sadd.s32 1, %s1337_s23   ;;  %s1697_s18 = smov %s1321_s19 }
 0x2da   : > { %p15_p3 = scmp.ge.s32.totalorder %s18_s23, 4   ;;  %s1698_s19 = smov %s1325_s20 }
 0x2db   : > { %s1699_s20 = smov %s1435_s6  ;;  %s1700_s21 = smov %s1333_s22 }
 0x2dc   : > { %s1701_s22 = smov %s1703_s26  ;;  %17 = sbr.rel (!%p15_p3) target bundleno = 4 (0x4), region = 84 }
 0x2e1   :  { %1017 = vsyncpa [#allocation4], 1 }
 0x2e2   :  { %1019 = vsyncpa [#allocation4 + $0x1], 1 }

</bundles_post_ra>
